<compile_context>
chip_gen: v5e
topology: v5e:2x2
jax: 0.10.0
libtpu: 0.0.40
codegen_flags: <defaults>
</compile_context>

<pallas_src>
import jax
import jax.numpy as jnp
from jax.experimental import pallas as pl
from jax.experimental.pallas import tpu as pltpu


def mamdani_kernel(deg_ref, links_ref, centers_ref, widths_ref, out_ref):
    # Rule->consequence one-hot mask arrives as int8; cast in-kernel (cheap VPU
    # op, hidden under the degrees DMA).  Portable across v5e/v6e/v7x.
    mask = links_ref[...].astype(jnp.float32)                    # (R, V, T)

    # Hoist the (V, T)-only math out of the (R, V, T) broadcast.
    # Equivalent to torch's nan_to_num(mask * c * w) / nan_to_num(mask * w)
    # ordering because mask is strictly 0/1:
    #   mask=0: 0 * anything-non-finite -> NaN -> 0 in torch; 0 * finite here.
    #   mask=1: identical products, identical nan_to_num.
    cw = jnp.nan_to_num(centers_ref[...] * widths_ref[...])      # (V, T)
    w = jnp.nan_to_num(widths_ref[...])                          # (V, T)

    num = (mask * cw).sum(axis=-1)                               # (R, V)
    den = (mask * w).sum(axis=-1)                                # (R, V)
    # Exact reciprocal to match torch numerics; approx=True moves this onto the
    # EUP (free bundle slot) if accuracy allows.
    centroid = num * pl.reciprocal(den, approx=False)            # (R, V)

    # Rule contraction on the MXU: (tile_b, R) @ (R, V) with f32 accumulation.
    out_ref[...] = jnp.dot(
        deg_ref[...], centroid, preferred_element_type=jnp.float32
    ).astype(out_ref.dtype)


def mamdani_forward(degrees, output_links, centers, widths, *, tile_b=256):
    """degrees: (B,R) f32; output_links: (R,V,T) int8 one-hot; centers/widths: (V,T) f32."""
    B, R = degrees.shape
    Rl, V, T = output_links.shape
    assert Rl == R
    assert centers.shape == (V, T) and widths.shape == (V, T)

    # Either the full batch (small B) or a sublane-aligned tile (large B).
    tile_b = min(tile_b, B)
    grid = (pl.cdiv(B, tile_b),)

    # TODO(synk): for very large R*V*T, split the (R, V) centroid into its own
    # pass (or persistent scratch under "arbitrary" semantics) so the steady-state
    # loop is pure matmul + degrees DMA.
    return pl.pallas_call(
        mamdani_kernel,
        out_shape=jax.ShapeDtypeStruct((B, V), jnp.float32),
        grid=grid,
        in_specs=[
            pl.BlockSpec((tile_b, R), lambda i: (i, 0)),   # degrees: tiled over batch
            pl.BlockSpec((R, V, T), lambda i: (0, 0, 0)),  # int8 links: VMEM-resident
            pl.BlockSpec((V, T), lambda i: (0, 0)),        # centers: VMEM-resident
            pl.BlockSpec((V, T), lambda i: (0, 0)),        # widths: VMEM-resident
        ],
        out_specs=pl.BlockSpec((tile_b, V), lambda i: (i, 0)),
        compiler_params=pltpu.CompilerParams(
            dimension_semantics=("parallel",),  # batch tiles shard across TCs
        ),
    )(degrees, output_links, centers, widths)


if __name__ == "__main__":
    # Small, deterministic synthetic problem:
    #   B = 2 batch, R = 8 rules, V = 4 output variables, T = 16 terms per variable.
    B, R, V, T = 2, 8, 4, 16
    key = jax.random.PRNGKey(0)
    k1, k2, k3, k4 = jax.random.split(key, 4)

    # Rule firing levels in [0, 1).
    degrees = jax.random.uniform(k1, (B, R), dtype=jnp.float32)

    # output_links: each (rule, output var) links to exactly one consequence term
    # (one-hot over terms), stored as int8 like the torch module.
    term_idx = jax.random.randint(k2, (R, V), 0, T)
    output_links = jax.nn.one_hot(term_idx, T, dtype=jnp.int8)       # (R, V, T)

    # Consequence fuzzy-set parameters (FuzzySetGroup centers / widths).
    centers = jax.random.normal(k3, (V, T), dtype=jnp.float32)
    widths = jax.random.uniform(k4, (V, T), minval=0.5, maxval=1.5,
                                dtype=jnp.float32)

    out = mamdani_forward(degrees, output_links, centers, widths)
    out = jax.block_until_ready(out)

    # Pure-JAX reference (mirrors the torch forward exactly).
    mask = output_links.astype(jnp.float32)
    num = jnp.nan_to_num(mask * centers * widths).sum(-1)           # (R, V)
    den = jnp.nan_to_num(mask * widths).sum(-1)                     # (R, V)
    ref = (degrees[..., None] * (num / den)[None]).sum(axis=1)      # (B, V)

    assert out.shape == (B, V)
    assert jnp.allclose(out, ref, atol=1e-5, rtol=1e-5), (out, ref)
    print("KERNEL_OK")
</pallas_src>

<mosaic_0001>
module attributes {stable_mosaic.version = 11 : i64} {
  func.func @mamdani_kernel(%arg0: i32, %arg1: memref<2x8xf32, #tpu.memory_space<vmem>>, %arg2: memref<8x4x16xi8, #tpu.memory_space<vmem>>, %arg3: memref<4x16xf32, #tpu.memory_space<vmem>>, %arg4: memref<4x16xf32, #tpu.memory_space<vmem>>, %arg5: memref<2x4xf32, #tpu.memory_space<vmem>>) attributes {dimension_semantics = [#tpu.dimension_semantics<parallel>], iteration_bounds = array<i64: 1>, scalar_prefetch = 0 : i64, scratch_operands = 0 : i64, tpu.core_type = #tpu.core_type<tc>, window_params = [{transform_indices = @transform_0, window_bounds = array<i64: 2, 8>}, {pipeline_mode = #tpu.pipeline_mode<synchronous>, transform_indices = @transform_1, window_bounds = array<i64: 8, 4, 16>}, {pipeline_mode = #tpu.pipeline_mode<synchronous>, transform_indices = @transform_2, window_bounds = array<i64: 4, 16>}, {pipeline_mode = #tpu.pipeline_mode<synchronous>, transform_indices = @transform_3, window_bounds = array<i64: 4, 16>}, {transform_indices = @transform_4, window_bounds = array<i64: 2, 4>}]} {
    %c0 = arith.constant 0 : index
    %c0_0 = arith.constant 0 : index
    %c0_1 = arith.constant 0 : index
    %0 = vector.load %arg2[%c0, %c0_0, %c0_1] : memref<8x4x16xi8, #tpu.memory_space<vmem>>, vector<8x4x16xi8>
    %1 = arith.sitofp %0 : vector<8x4x16xi8> to vector<8x4x16xf32>
    %c0_2 = arith.constant 0 : index
    %c0_3 = arith.constant 0 : index
    %2 = vector.load %arg3[%c0_2, %c0_3] : memref<4x16xf32, #tpu.memory_space<vmem>>, vector<4x16xf32>
    %c0_4 = arith.constant 0 : index
    %c0_5 = arith.constant 0 : index
    %3 = vector.load %arg4[%c0_4, %c0_5] : memref<4x16xf32, #tpu.memory_space<vmem>>, vector<4x16xf32>
    %4 = arith.mulf %2, %3 : vector<4x16xf32>
    %5 = arith.cmpf one, %4, %4 : vector<4x16xf32>
    %cst = arith.constant 0.000000e+00 : f32
    %6 = vector.broadcast %cst : f32 to vector<4x16xf32>
    %7 = arith.select %5, %6, %4 : vector<4x16xi1>, vector<4x16xf32>
    %cst_6 = arith.constant 0x7F800000 : f32
    %8 = vector.broadcast %cst_6 : f32 to vector<4x16xf32>
    %9 = arith.cmpf oeq, %7, %8 : vector<4x16xf32>
    %cst_7 = arith.constant 3.40282347E+38 : f32
    %10 = vector.broadcast %cst_7 : f32 to vector<4x16xf32>
    %11 = arith.select %9, %10, %7 : vector<4x16xi1>, vector<4x16xf32>
    %cst_8 = arith.constant 0xFF800000 : f32
    %12 = vector.broadcast %cst_8 : f32 to vector<4x16xf32>
    %13 = arith.cmpf oeq, %11, %12 : vector<4x16xf32>
    %cst_9 = arith.constant -3.40282347E+38 : f32
    %14 = vector.broadcast %cst_9 : f32 to vector<4x16xf32>
    %15 = arith.select %13, %14, %11 : vector<4x16xi1>, vector<4x16xf32>
    %c0_10 = arith.constant 0 : index
    %c0_11 = arith.constant 0 : index
    %16 = vector.load %arg4[%c0_10, %c0_11] : memref<4x16xf32, #tpu.memory_space<vmem>>, vector<4x16xf32>
    %17 = arith.cmpf one, %16, %16 : vector<4x16xf32>
    %cst_12 = arith.constant 0.000000e+00 : f32
    %18 = vector.broadcast %cst_12 : f32 to vector<4x16xf32>
    %19 = arith.select %17, %18, %16 : vector<4x16xi1>, vector<4x16xf32>
    %cst_13 = arith.constant 0x7F800000 : f32
    %20 = vector.broadcast %cst_13 : f32 to vector<4x16xf32>
    %21 = arith.cmpf oeq, %19, %20 : vector<4x16xf32>
    %cst_14 = arith.constant 3.40282347E+38 : f32
    %22 = vector.broadcast %cst_14 : f32 to vector<4x16xf32>
    %23 = arith.select %21, %22, %19 : vector<4x16xi1>, vector<4x16xf32>
    %cst_15 = arith.constant 0xFF800000 : f32
    %24 = vector.broadcast %cst_15 : f32 to vector<4x16xf32>
    %25 = arith.cmpf oeq, %23, %24 : vector<4x16xf32>
    %cst_16 = arith.constant -3.40282347E+38 : f32
    %26 = vector.broadcast %cst_16 : f32 to vector<4x16xf32>
    %27 = arith.select %25, %26, %23 : vector<4x16xi1>, vector<4x16xf32>
    %28 = vector.shape_cast %15 : vector<4x16xf32> to vector<1x4x16xf32>
    %29 = vector.broadcast %28 : vector<1x4x16xf32> to vector<8x4x16xf32>
    %30 = arith.mulf %1, %29 : vector<8x4x16xf32>
    %cst_17 = arith.constant dense<0.000000e+00> : vector<8x4xf32>
    %31 = vector.multi_reduction <add>, %30, %cst_17 [2] : vector<8x4x16xf32> to vector<8x4xf32>
    %32 = vector.shape_cast %27 : vector<4x16xf32> to vector<1x4x16xf32>
    %33 = vector.broadcast %32 : vector<1x4x16xf32> to vector<8x4x16xf32>
    %34 = arith.mulf %1, %33 : vector<8x4x16xf32>
    %cst_18 = arith.constant dense<0.000000e+00> : vector<8x4xf32>
    %35 = vector.multi_reduction <add>, %34, %cst_18 [2] : vector<8x4x16xf32> to vector<8x4xf32>
    %36 = tpu.reciprocal %35 : vector<8x4xf32> -> vector<8x4xf32>
    %37 = arith.mulf %31, %36 : vector<8x4xf32>
    %c0_19 = arith.constant 0 : index
    %c0_20 = arith.constant 0 : index
    %38 = vector.load %arg1[%c0_19, %c0_20] : memref<2x8xf32, #tpu.memory_space<vmem>>, vector<2x8xf32>
    %cst_21 = arith.constant dense<0.000000e+00> : vector<2x4xf32>
    %39 = tpu.matmul %38, %37, %cst_21 {dimension_numbers = #tpu.dot_dimension_numbers<[1], [0], [0], [1], [0, 0, 1, 1], [], []>} : vector<2x8xf32>, vector<8x4xf32>, vector<2x4xf32> -> vector<2x4xf32>
    %c0_22 = arith.constant 0 : index
    %c0_23 = arith.constant 0 : index
    %40 = vector.load %arg5[%c0_22, %c0_23] : memref<2x4xf32, #tpu.memory_space<vmem>>, vector<2x4xf32>
    tpu.vector_store %arg5[%c0_22, %c0_23], %39 {strides = array<i32>} : memref<2x4xf32, #tpu.memory_space<vmem>>, vector<2x4xf32>,
    return
  }
  func.func @transform_0(%arg0: i32) -> (i32, i32) {
    %c0_i32 = arith.constant 0 : i32
    %c0_i32_0 = arith.constant 0 : i32
    return %arg0, %c0_i32 : i32, i32
  }
  func.func @transform_1(%arg0: i32) -> (i32, i32, i32) {
    %c0_i32 = arith.constant 0 : i32
    %c0_i32_0 = arith.constant 0 : i32
    %c0_i32_1 = arith.constant 0 : i32
    %c0_i32_2 = arith.constant 0 : i32
    return %c0_i32, %c0_i32_0, %c0_i32_1 : i32, i32, i32
  }
  func.func @transform_2(%arg0: i32) -> (i32, i32) {
    %c0_i32 = arith.constant 0 : i32
    %c0_i32_0 = arith.constant 0 : i32
    %c0_i32_1 = arith.constant 0 : i32
    return %c0_i32, %c0_i32_0 : i32, i32
  }
  func.func @transform_3(%arg0: i32) -> (i32, i32) {
    %c0_i32 = arith.constant 0 : i32
    %c0_i32_0 = arith.constant 0 : i32
    %c0_i32_1 = arith.constant 0 : i32
    return %c0_i32, %c0_i32_0 : i32, i32
  }
  func.func @transform_4(%arg0: i32) -> (i32, i32) {
    %c0_i32 = arith.constant 0 : i32
    %c0_i32_0 = arith.constant 0 : i32
    return %arg0, %c0_i32 : i32, i32
  }
}

</mosaic_0001>

<bundles_post_ra>
// kernel: tpu_custom_call.1
= control target key start
LH: loop header
LB: loop body
LE: loop exit
PB: predicated region body
PF: predicated region fallthrough
CT: control target
= control target key end

     0   :  { %9 = vsyncpa [#allocation3], 0  ;;  %s796_s0 = inlined_call_operand.hbm [shape: f32[2,8], index: 0, kind: input, shape index: {}]   ;;  %s797_s1 = inlined_call_operand.hbm [shape: s8[8,4,16], index: 1, kind: input, shape index: {}]   ;;  %s798_s2 = inlined_call_operand.hbm [shape: f32[4,16], index: 2, kind: input, shape index: {}]   ;;  %s799_s3 = inlined_call_operand.hbm [shape: f32[4,16], index: 3, kind: input, shape index: {}]   ;;  %s800_s4 = inlined_call_operand.hbm [shape: f32[2,4], index: 4, kind: output, shape index: {}]  }
   0x1   :  { %10 = vsyncpa [#allocation6], 0 }
   0x2   :  { %11 = vsyncpa [#allocation9], 0  ;;  %s28_s17 = sshll.u32 %s797_s1, 4  ;;  %s29_s17 = int_to_ptr.hbm [resolvable:$true] %s28_s17 }
   0x3   :  { %12 = vsyncpa [#allocation4], 0  ;;  %s530_s18 = smov [#allocation5]   ;;  %s18_s22 = sshll.u32 %s796_s0, 4  ;;  %s19_s22 = int_to_ptr.hbm [resolvable:$true] %s18_s22 }
   0x4   :  { %s30_s19 = sshll.u32 %s530_s18, 4  ;;  %s531_s23 = smov 16   ;;  %s31_s19 = int_to_ptr.vmem [resolvable:$true] %s30_s19 }
   0x5   :  { %s532_s24 = smov 1   ;;  %s533_s25 = smov [#allocation2]  }
   0x6   :  { %36 = dma.hbm_to_vmem [thread:$0]  %s29_s17, 128, %s31_s19, [#allocation6], %s531_s23, %s531_s23, %s532_s24  }
   0x7   :  { %s20_s26 = sshll.u32 %s533_s25, 4  ;;  %s42_s29 = sshll.u32 %s798_s2, 4  ;;  %s21_s26 = int_to_ptr.vmem [resolvable:$true] %s20_s26  ;;  %s43_s29 = int_to_ptr.hbm [resolvable:$true] %s42_s29 }
   0x8   :  { %23 = dma.hbm_to_vmem [thread:$0]  %s19_s22, 32, %s21_s26, [#allocation3]  }
   0x9   :  { %s53_s5 = sshll.u32 %s799_s3, 4  ;;  %s534_s6 = smov [#allocation7]   ;;  %s54_s5 = int_to_ptr.hbm [resolvable:$true] %s53_s5 }
   0xa   :  { %s44_s7 = sshll.u32 %s534_s6, 4  ;;  %s535_s0 = smov [#allocation8]   ;;  %s45_s7 = int_to_ptr.vmem [resolvable:$true] %s44_s7 }
   0xb   :  { %47 = dma.hbm_to_vmem [thread:$0]  %s43_s29, 64, %s45_s7, [#allocation6]  }
   0xc   :  { %s55_s8 = sshll.u32 %s535_s0, 4  ;;  %s56_s8 = int_to_ptr.vmem [resolvable:$true] %s55_s8 }
   0xd   :  { %58 = dma.hbm_to_vmem [thread:$0]  %s54_s5, 64, %s56_s8, [#allocation9]  }
   0xe   :  { %522 = dma.done.wait [#allocation3], 32  }
   0xf   :  { %523 = vsyncadd [#allocation3], 4294967264 }
  0x10   :  { %524 = dma.done.wait [#allocation6], 192  }
  0x11   :  { %525 = vsyncadd [#allocation6], 4294967104 }
  0x12   :  { %526 = dma.done.wait [#allocation9], 64  }
  0x13   :  { %527 = vsyncadd [#allocation9], 4294967232  ;;  %v79_v0 = vld [vmem:[#allocation5 + $0x4] sm:$0x1]  ;;  %v100_v1 = vld [vmem:[#allocation8] sm:$0xf] }
  0x14   :  { %v77_v2 = vld [vmem:[#allocation5 + $0x2] sm:$0x1]  ;;  %v87_v3 = vunpack.c.0.s8 %v79_v0  ;;  %vm108_vm0 = vcmp.ne.f32.partialorder %v100_v1, %v100_v1  ;;  %v75_v5 = vld [vmem:[#allocation5] sm:$0x1]  ;;  %v80_v6 = vld [vmem:[#allocation5 + $0x5] sm:$0x1] }
  0x15   :  { %v85_v4 = vunpack.c.0.s8 %v77_v2  ;;  %v78_v7 = vld [vmem:[#allocation5 + $0x3] sm:$0x1]  ;;  %v109_v8 = vsel %vm108_vm0, 0.0, %v100_v1  ;;  %v83_v9 = vunpack.c.0.s8 %v75_v5  ;;  %v88_v10 = vunpack.c.0.s8 %v80_v6  ;;  %v76_v12 = vld [vmem:[#allocation5 + $0x1] sm:$0x1]  ;;  %s536_s2 = smov [#allocation10]  }
  0x16   :  { %v86_v11 = vunpack.c.0.s8 %v78_v7  ;;  %v574_v13 = vcvt.s32.f32 %v87_v3  ;;  %vm110_vm1 = vcmp.eq.f32.partialorder %v109_v8, inf  ;;  %v84_v17 = vunpack.c.0.s8 %v76_v12  ;;  %v99_v18 = vld [vmem:[#allocation7] sm:$0xf]  ;;  %v82_v27 = vld [vmem:[#allocation5 + $0x7] sm:$0x1]  ;;  %s364_s3 = sshll.u32 %s536_s2, 4  ;;  %s365_s3 = int_to_ptr.vmem [resolvable:$true] %s364_s3 }
  0x17   :  { %v93_v14 = vcvt.s32.f32 %v85_v4  ;;  %v111_v15 = vsel %vm110_vm1, 3.4028235e+38, %v109_v8  ;;  %v91_v16 = vcvt.s32.f32 %v83_v9  ;;  %vm122_vm3 = vcmask 125952   ;;  %v81_v31 = vld [vmem:[#allocation5 + $0x6] sm:$0x1]  ;;  %s366_s11 = sshll.u32 %s800_s4, 4  ;;  %s367_s11 = int_to_ptr.hbm [resolvable:$true] %s366_s11 }
  0x18   :  { %vm112_vm2 = vcmp.eq.f32.partialorder %v111_v15, -inf  ;;  %v96_v20 = vcvt.s32.f32 %v88_v10  ;;  %v94_v21 = vcvt.s32.f32 %v86_v11  ;;  %v101_v25 = vmul.f32 %v100_v1, %v99_v18 }
  0x19   :  { %v113_v19 = vsel %vm112_vm2, -3.4028235e+38, %v111_v15  ;;  %v92_v26 = vcvt.s32.f32 %v84_v17  ;;  %v90_v34 = vunpack.c.0.s8 %v82_v27  ;;  %v89_v36 = vunpack.c.0.s8 %v81_v31 }
  0x1a   :  { %v151_v22 = vmul.f32 %v113_v19, %v574_v13  ;;  %v149_v23 = vmul.f32 %v113_v19, %v93_v14  ;;  %v147_v24 = vmul.f32 %v113_v19, %v91_v16  ;;  %v152_v32 = vmul.f32 %v113_v19, %v96_v20 }
  0x1b   :  { %v150_v33 = vmul.f32 %v113_v19, %v94_v21  ;;  %vm102_vm4 = vcmp.ne.f32.partialorder %v101_v25, %v101_v25  ;;  %v148_v35 = vmul.f32 %v113_v19, %v92_v26  ;;  %v98_v41 = vcvt.s32.f32 %v90_v34 }
  0x1c   :  { %v167_v28 = vsel %vm122_vm3, %v151_v22, 0.0  ;;  %v161_v29 = vsel %vm122_vm3, %v149_v23, 0.0  ;;  %v155_v30 = vsel %vm122_vm3, %v147_v24, 0.0  ;;  %v103_v37 = vsel %vm102_vm4, 0.0, %v101_v25 }
  0x1d   :  { %168 = vadd.xlane.f32.xlu2 %v167_v28  ;;  %162 = vadd.xlane.f32.xlu1 %v161_v29  ;;  %vm104_vm5 = vcmp.eq.f32.partialorder %v103_v37, inf  ;;  %v170_v39 = vsel %vm122_vm3, %v152_v32, 0.0  ;;  %v164_v40 = vsel %vm122_vm3, %v150_v33, 0.0  ;;  %v158_v42 = vsel %vm122_vm3, %v148_v35, 0.0 }
  0x1e   :  { %156 = vadd.xlane.f32.xlu0 %v155_v30  ;;  %v105_v38 = vsel %vm104_vm5, 3.4028235e+38, %v103_v37  ;;  %v97_v43 = vcvt.s32.f32 %v89_v36  ;;  %v154_v45 = vmul.f32 %v113_v19, %v98_v41  ;;  %v308_v5 = vlaneseq }
  0x1f   :  { %vm106_vm6 = vcmp.eq.f32.partialorder %v105_v38, -inf }
  0x20   :  { %v107_v44 = vsel %vm106_vm6, -3.4028235e+38, %v105_v38  ;;  %v153_v47 = vmul.f32 %v113_v19, %v97_v43  ;;  %v176_v48 = vsel %vm122_vm3, %v154_v45, 0.0  ;;  %v620_v17 = vand.u32 127, %v308_v5 }
  0x21   :  { %v114_v46 = vmul.f32 %v107_v44, %v91_v16  ;;  %v116_v51 = vmul.f32 %v107_v44, %v93_v14  ;;  %v117_v52 = vmul.f32 %v107_v44, %v94_v21  ;;  %v115_v53 = vmul.f32 %v107_v44, %v92_v26 }
  0x22   :  { %v173_v50 = vsel %vm122_vm3, %v153_v47, 0.0  ;;  %v119_v57 = vmul.f32 %v107_v44, %v96_v20  ;;  %v120_v58 = vmul.f32 %v107_v44, %v97_v43  ;;  %v118_v59 = vmul.f32 %v107_v44, %v574_v13 }
  0x23   :  { %v123_v49 = vsel %vm122_vm3, %v114_v46, 0.0  ;;  %v129_v54 = vsel %vm122_vm3, %v116_v51, 0.0  ;;  %v132_v55 = vsel %vm122_vm3, %v117_v52, 0.0  ;;  %v126_v56 = vsel %vm122_vm3, %v115_v53, 0.0 }
  0x24   :  { %v138_v60 = vsel %vm122_vm3, %v119_v57, 0.0  ;;  %v141_v61 = vsel %vm122_vm3, %v120_v58, 0.0  ;;  %v135_v62 = vsel %vm122_vm3, %v118_v59, 0.0  ;;  %v121_v63 = vmul.f32 %v107_v44, %v98_v41 }
  0x25   :  { %171 = vadd.xlane.f32.xlu2 %v170_v39  ;;  %165 = vadd.xlane.f32.xlu1 %v164_v40 }
  0x26   :  { %159 = vadd.xlane.f32.xlu0 %v158_v42  ;;  %v144_v0 = vsel %vm122_vm3, %v121_v63, 0.0 }
  0x2d   :  { %177 = vadd.xlane.f32.xlu1 %v176_v48  ;;  %124 = vadd.xlane.f32.xlu2 %v123_v49 }
  0x2e   :  { %174 = vadd.xlane.f32.xlu0 %v173_v50 }
  0x35   :  { %130 = vadd.xlane.f32.xlu1 %v129_v54  ;;  %133 = vadd.xlane.f32.xlu2 %v132_v55 }
  0x36   :  { %127 = vadd.xlane.f32.xlu0 %v126_v56 }
  0x3d   :  { %139 = vadd.xlane.f32.xlu1 %v138_v60  ;;  %142 = vadd.xlane.f32.xlu2 %v141_v61 }
  0x3e   :  { %136 = vadd.xlane.f32.xlu0 %v135_v62 }
  0x46   :  { %145 = vadd.xlane.f32.xlu0 %v144_v0 }
  0x90   :  { %v594_v1 = vpop.xlane.xlu2 %168  ;;  %v596_v2 = vpop.xlane.xlu1 %162 }
  0x91   :  { %386 = vrcp.f32 %v594_v1  ;;  %v157_v3 = vpop.xlane.xlu0 %156  ;;  %v218_v13 = vand.u32 2147483648, %v596_v2  ;;  %v246_v16 = vand.u32 2147483648, %v594_v1  ;;  %vm212_vm7 = vweird.f32 %v596_v2 }
  0x92   :  { %388 = vrcp.f32 %v596_v2  ;;  %v188_v12 = vand.u32 2147483647, %v157_v3  ;;  %v190_v15 = vand.u32 2147483648, %v157_v3  ;;  %vm184_vm8 = vweird.f32 %v157_v3 }
  0x93   :  { %390 = vrcp.f32 %v157_v3  ;;  %v216_v22 = vand.u32 2147483647, %v596_v2  ;;  %v630_v23 = vor.u32 1.1754944e-38, %v218_v13  ;;  %v244_v26 = vand.u32 2147483647, %v594_v1 }
  0x94   :  { %vm625_vm9 = vcmp.eq.f32.partialorder %v188_v12, 8.507059e+37  ;;  %v191_v25 = vor.u32 1.1754944e-38, %v190_v15  ;;  %v634_v27 = vor.u32 1.1754944e-38, %v246_v16  ;;  %vm240_vm13 = vweird.f32 %v594_v1 }
  0x95   :  { %vm668_vm1 = vcmp.eq.f32.partialorder %v216_v22, 8.507059e+37 }
  0x97   :  { %v600_v4 = vpop.eup %386 }
  0x98   :  { %v602_v6 = vpop.eup %388  ;;  %v604_v7 = vpop.xlane.xlu2 %171  ;;  %v236_v18 = vmul.f32 %v600_v4, %v594_v1  ;;  %vm241_vm14 = vweird.f32 %v600_v4 }
  0x99   :  { %v606_v8 = vpop.xlane.xlu1 %165  ;;  %v608_v9 = vpop.eup %390  ;;  %v208_v10 = vmul.f32 %v602_v6, %v596_v2  ;;  %392 = vrcp.f32 %v604_v7  ;;  %vm213_vm11 = vweird.f32 %v602_v6  ;;  %vm254_vm3 = vweird.f32 %v604_v7 }
  0x9a   :  { %v613_v11 = vpop.xlane.xlu0 %159  ;;  %v180_v14 = vmul.f32 %v608_v9, %v157_v3  ;;  %394 = vrcp.f32 %v606_v8  ;;  %vm185_vm10 = vweird.f32 %v608_v9  ;;  %vm226_vm12 = vweird.f32 %v606_v8 }
  0x9b   :  { %396 = vrcp.f32 %v613_v11  ;;  %v209_v19 = vsub.f32 1.0, %v208_v10  ;;  %v202_v29 = vand.u32 2147483647, %v613_v11  ;;  %v237_v31 = vsub.f32 1.0, %v236_v18  ;;  %vm664_vm0 = vmor %vm184_vm8, %vm185_vm10 }
  0x9c   :  { %v181_v20 = vsub.f32 1.0, %v180_v14  ;;  %vm198_vm15 = vweird.f32 %v613_v11  ;;  %v204_v40 = vand.u32 2147483648, %v613_v11  ;;  %v230_v45 = vand.u32 2147483647, %v606_v8  ;;  %vm696_vm8 = vmor %vm212_vm7, %vm213_vm11 }
  0x9d   :  { %v210_v36 = vmul.f32 %v602_v6, %v209_v19  ;;  %vm676_vm2 = vcmp.eq.f32.partialorder %v202_v29, 8.507059e+37  ;;  %v232_v49 = vand.u32 2147483648, %v606_v8  ;;  %v238_v52 = vmul.f32 %v600_v4, %v237_v31 }
  0x9e   :  { %v182_v24 = vmul.f32 %v608_v9, %v181_v20  ;;  %v205_v53 = vor.u32 1.1754944e-38, %v204_v40  ;;  %v258_v55 = vand.u32 2147483647, %v604_v7  ;;  %vm701_vm10 = vcmp.eq.f32.partialorder %v230_v45, 8.507059e+37 }
  0x9f   :  { %v636_v28 = vpop.eup %392  ;;  %v211_v51 = vadd.f32 %v602_v6, %v210_v36  ;;  %v233_v63 = vor.u32 1.1754944e-38, %v232_v49  ;;  %v260_v0 = vand.u32 2147483648, %v604_v7  ;;  %vm320_vm11 = vcmask 1042434  }
  0xa0   :  { %v642_v30 = vpop.eup %394  ;;  %v250_v32 = vmul.f32 %v636_v28, %v604_v7  ;;  %v183_v34 = vadd.f32 %v608_v9, %v182_v24  ;;  %v125_v35 = vpop.xlane.xlu2 %124  ;;  %v239_v15 = vadd.f32 %v600_v4, %v238_v52  ;;  %vm729_vm4 = vcmp.eq.f32.partialorder %v258_v55, 8.507059e+37 }
  0xa1   :  { %v646_v33 = vpop.xlane.xlu1 %177  ;;  %v397_v37 = vpop.eup %396  ;;  %v222_v38 = vmul.f32 %v642_v30, %v606_v8  ;;  %vm227_vm5 = vweird.f32 %v642_v30  ;;  %v261_v31 = vor.u32 1.1754944e-38, %v260_v0 }
  0xa2   :  { %398 = vrcp.f32 %v646_v33  ;;  %v655_v39 = vpop.xlane.xlu0 %174  ;;  %v251_v41 = vsub.f32 1.0, %v250_v32  ;;  %v194_v42 = vmul.f32 %v397_v37, %v613_v11  ;;  %v187_v47 = vsel %vm664_vm0, %v608_v9, %v183_v34  ;;  %vm719_vm7 = vmor %vm226_vm12, %vm227_vm5 }
  0xa3   :  { %400 = vrcp.f32 %v655_v39  ;;  %v223_v46 = vsub.f32 1.0, %v222_v38  ;;  %v192_v56 = vsel %vm625_vm9, %v191_v25, %v187_v47  ;;  %vm199_vm6 = vweird.f32 %v397_v37  ;;  %vm746_vm12 = vmor %vm240_vm13, %vm241_vm14 }
  0xa4   :  { %v195_v50 = vsub.f32 1.0, %v194_v42  ;;  %v252_v58 = vmul.f32 %v636_v28, %v251_v41  ;;  %vm706_vm9 = vcmp.eq.f32.partialorder %v244_v26, 8.507059e+37  ;;  %v215_v9 = vsel %vm696_vm8, %v602_v6, %v211_v51  ;;  %vm200_vm0 = vmor %vm198_vm15, %vm199_vm6 }
  0xa5   :  { %v224_v54 = vmul.f32 %v642_v30, %v223_v46  ;;  %v291_v18 = vmul.f32 %v192_v56, %v125_v35  ;;  %vm255_vm8 = vweird.f32 %v636_v28  ;;  %v220_v11 = vsel %vm668_vm1, %v630_v23, %v215_v9 }
  0xa6   :  { %v196_v57 = vmul.f32 %v397_v37, %v195_v50  ;;  %v253_v22 = vadd.f32 %v636_v28, %v252_v58  ;;  %v272_v29 = vand.u32 2147483647, %v655_v39  ;;  %v243_v32 = vsel %vm746_vm12, %v600_v4, %v239_v15  ;;  %vm761_vm13 = vmor %vm254_vm3, %vm255_vm8 }
  0xa7   :  { %v225_v61 = vadd.f32 %v642_v30, %v224_v54  ;;  %v274_v23 = vand.u32 2147483648, %v655_v39  ;;  %vm268_vm15 = vweird.f32 %v655_v39  ;;  %vm823_vm3 = vcmask 1041409  }
  0xa8   :  { %v690_v59 = vpop.eup %398  ;;  %v197_v12 = vadd.f32 %v397_v37, %v196_v57  ;;  %v134_v14 = vpop.xlane.xlu2 %133  ;;  %v257_v38 = vsel %vm761_vm13, %v636_v28, %v253_v22  ;;  %vm273_vm1 = vcmp.eq.f32.partialorder %v272_v29, 8.507059e+37  ;;  %v248_v44 = vsel %vm706_vm9, %v634_v27, %v243_v32 }
  0xa9   :  { %v401_v5 = vpop.eup %400  ;;  %v278_v2 = vmul.f32 %v690_v59, %v646_v33  ;;  %v131_v10 = vpop.xlane.xlu1 %130  ;;  %v229_v21 = vsel %vm719_vm7, %v642_v30, %v225_v61  ;;  %v275_v45 = vor.u32 1.1754944e-38, %v274_v23  ;;  %v262_v46 = vsel %vm729_vm4, %v261_v31, %v257_v38 }
  0xaa   :  { %v264_v16 = vmul.f32 %v401_v5, %v655_v39  ;;  %v128_v6 = vpop.xlane.xlu0 %127  ;;  %v201_v20 = vsel %vm200_vm0, %v397_v37, %v197_v12  ;;  %v293_v34 = vmul.f32 %v220_v11, %v131_v10  ;;  %v234_v35 = vsel %vm701_vm10, %v233_v63, %v229_v21  ;;  %v299_v12 = vld [vmem:[#allocation2] sm:$0x3] }
  0xab   :  { %v279_v19 = vsub.f32 1.0, %v278_v2  ;;  %v206_v25 = vsel %vm676_vm2, %v205_v53, %v201_v20  ;;  %vm269_vm14 = vweird.f32 %v401_v5  ;;  %v310_v37 = vperm.slane %v291_v18, %v620_v17 }
  0xac   :  { %v265_v24 = vsub.f32 1.0, %v264_v16  ;;  %v292_v30 = vmul.f32 %v206_v25, %v128_v6  ;;  %vm282_vm2 = vweird.f32 %v646_v33  ;;  %v294_v42 = vmul.f32 %v234_v35, %v134_v14  ;;  %vm270_vm5 = vmor %vm268_vm15, %vm269_vm14 }
  0xad   :  { %v280_v40 = vmul.f32 %v690_v59, %v279_v19  ;;  %v312_v28 = vperm.slane %v293_v34, %v620_v17  ;;  %vm283_vm6 = vweird.f32 %v690_v59  ;;  %vm322_vm10 = vcmask 1043459  }
  0xae   :  { %v266_v36 = vmul.f32 %v401_v5, %v265_v24  ;;  %v311_v4 = vperm.slane %v292_v30, %v620_v17  ;;  %v288_v27 = vand.u32 2147483648, %v646_v33  ;;  %v313_v54 = vperm.slane %v294_v42, %v620_v17  ;;  %vm284_vm9 = vmor %vm282_vm2, %vm283_vm6 }
  0xaf   :  { %v281_v52 = vadd.f32 %v690_v59, %v280_v40  ;;  %v286_v56 = vand.u32 2147483647, %v646_v33  ;;  %vm324_vm4 = vcmask 1044484   ;;  %vm326_vm7 = vcmask 1045509  }
  0xb0   :  { %v267_v41 = vadd.f32 %v401_v5, %v266_v36  ;;  %v319_v7 = vsel %vm823_vm3, %v311_v4, %v310_v37  ;;  %v143_v51 = vpop.xlane.xlu2 %142  ;;  %v289_v62 = vor.u32 1.1754944e-38, %v288_v27  ;;  %vm328_vm0 = vcmask 1046534  }
  0xb1   :  { %v140_v43 = vpop.xlane.xlu1 %139  ;;  %v321_v53 = vsel %vm320_vm11, %v312_v28, %v319_v7  ;;  %v285_v61 = vsel %vm284_vm9, %v690_v59, %v281_v52  ;;  %vm287_vm11 = vcmp.eq.f32.partialorder %v286_v56, 8.507059e+37  ;;  %vm330_vm8 = vcmask 1047559  }
  0xb2   :  { %v137_v47 = vpop.xlane.xlu0 %136  ;;  %v271_v39 = vsel %vm270_vm5, %v401_v5, %v267_v41  ;;  %v296_v48 = vmul.f32 %v262_v46, %v140_v43  ;;  %v323_v58 = vsel %vm322_vm10, %v313_v54, %v321_v53  ;;  %v290_v3 = vsel %vm287_vm11, %v289_v62, %v285_v61 }
  0xb3   :  { %v295_v49 = vmul.f32 %v248_v44, %v137_v47  ;;  %v276_v50 = vsel %vm273_vm1, %v275_v45, %v271_v39  ;;  %vm333_vm12 = vcmask 64512   ;;  %vm357_vm13 = vcmask 25600  }
  0xb4   :  { %v297_v57 = vmul.f32 %v276_v50, %v143_v51  ;;  %v315_v60 = vperm.slane %v296_v48, %v620_v17 }
  0xb5   :  { %v314_v55 = vperm.slane %v295_v49, %v620_v17 }
  0xb6   :  { %v316_v0 = vperm.slane %v297_v57, %v620_v17 }
  0xb7   :  { %v325_v63 = vsel %vm324_vm4, %v314_v55, %v323_v58 }
  0xb8   :  { %v327_v9 = vsel %vm326_vm7, %v315_v60, %v325_v63 }
  0xb9   :  { %v329_v10 = vsel %vm328_vm0, %v316_v0, %v327_v9 }
  0xba   :  { %v146_v5 = vpop.xlane.xlu0 %145 }
  0xbb   :  { %v298_v2 = vmul.f32 %v290_v3, %v146_v5 }
  0xbd   :  { %v317_v33 = vperm.slane %v298_v2, %v620_v17 }
  0xbf   :  { %v331_v13 = vsel %vm330_vm8, %v317_v33, %v329_v10 }
  0xc0   :  { %352 = vmatpush.msra.mxu0 %v331_v13 }
  0xc1   :  { %378 = vmatmul.msk.f32.vlgmr.msra.gmra.mxu0 %vm333_vm12, %v299_v12 }
 0x13e   :  { %v354_v59 = vpop.f32.mrf.mxu0 }
 0x13f   :  { %358 = vst.msk [vmem:[#allocation10] sm:$0x3] %vm357_vm13, %v354_v59 }
 0x140   :  { %369 = dma.vmem_to_hbm [thread:$0]  %s365_s3, 32, %s367_s11, [#allocation4]  }
 0x141   :  { %528 = dma.done.wait [#allocation4], 32  }
 0x142   :  { %529 = vsyncadd [#allocation4], 4294967264 }
 0x143   :  { %374 = vsyncpa [#allocation3], 1 }
 0x144   :  { %375 = vsyncpa [#allocation6], 1 }
 0x145   :  { %376 = vsyncpa [#allocation9], 1 }
 0x146   :  { %377 = vsyncpa [#allocation4], 1 }

</bundles_post_ra>
